<compile_context>
chip_gen: v7x
topology: tpu7x:2x2x1
jax: 0.10.0
libtpu: 0.0.40
codegen_flags: <defaults>
</compile_context>

<pallas_src>
import functools

import numpy as np
import jax
from jax import lax
import jax.numpy as jnp
from jax.experimental import pallas as pl
from jax.experimental.pallas import tpu as pltpu


# ----------------------------------------------------------------------------
# Parameter construction (host-side glue, matches torch __init__)
# ----------------------------------------------------------------------------
def make_moving_avg_K(kernel_size: int, seq_length: int, stride: int = 1) -> np.ndarray:
    L = seq_length
    out_cols = int((L - kernel_size) / stride + 1)      # matches torch's int(float)
    K0 = np.zeros((L, out_cols), dtype=np.float32)
    start = 0
    for i in range(out_cols):
        K0[start:start + kernel_size, i] = 1.0 / kernel_size
        start += stride

    # F.interpolate(K0[None], size=L, mode=...) along the last axis.
    if stride == 1:
        # 'nearest-exact': src = floor((dst + 0.5) * in/out), clamped.
        j = np.arange(L)
        src = np.clip(np.floor((j + 0.5) * out_cols / L).astype(np.int64), 0, out_cols - 1)
        K1 = K0[:, src]
    else:
        # 'linear', align_corners=False (torch clamps source coords below 0).
        j = np.arange(L, dtype=np.float64)
        x_src = np.maximum((j + 0.5) * (out_cols / L) - 0.5, 0.0)
        lo = np.clip(np.floor(x_src).astype(np.int64), 0, out_cols - 1)
        hi = np.clip(lo + 1, 0, out_cols - 1)
        w = (x_src - lo).astype(np.float32)
        K1 = K0[:, lo] * (1.0 - w)[None, :] + K0[:, hi] * w[None, :]

    # .squeeze().T -> (L, L)
    return np.ascontiguousarray(K1.T.astype(np.float32))


# ----------------------------------------------------------------------------
# Kernels
# ----------------------------------------------------------------------------
def _matmul_kernel(a_ref, b_ref, o_ref, *, precision):
    """o = a @ b with the whole contraction in one step: no accumulator,
    single direct store per output tile."""
    o_ref[...] = jnp.dot(
        a_ref[...], b_ref[...],
        preferred_element_type=jnp.float32,
        precision=precision,
    ).astype(o_ref.dtype)


def _matmul_acc_kernel(a_ref, b_ref, o_ref, acc_ref, *, precision):
    """o = a @ b with the contraction tiled along grid axis 2 ('arbitrary').
    First k step writes the accumulator directly (no zeros_like fill)."""
    k = pl.program_id(2)
    prod = jnp.dot(a_ref[...], b_ref[...],
                   preferred_element_type=jnp.float32, precision=precision)

    @pl.when(k == 0)
    def _init():
        acc_ref[...] = prod

    @pl.when(k > 0)
    def _accumulate():
        acc_ref[...] += prod

    @pl.when(k == pl.num_programs(2) - 1)
    def _store():
        o_ref[...] = acc_ref[...].astype(o_ref.dtype)


# ----------------------------------------------------------------------------
# Tiling helpers
# ----------------------------------------------------------------------------
def _round_up(v: int, m: int) -> int:
    return ((v + m - 1) // m) * m


def _choose_tile(dim: int, max_tile: int, granularity: int) -> tuple[int, int]:
    """Return (tile, padded_dim).

    Full dim (no padding, no (8,128) constraint) when it fits one tile;
    otherwise the largest granularity-aligned tile <= max_tile whose padding
    waste is <= 12.5% of dim, falling back to `granularity`."""
    if dim <= max_tile:
        return dim, dim
    t = (max_tile // granularity) * granularity
    while t >= granularity:
        if _round_up(dim, t) - dim <= dim // 8:
            return t, _round_up(dim, t)
        t -= granularity
    return granularity, _round_up(dim, granularity)


# ----------------------------------------------------------------------------
# Layout paths
# ----------------------------------------------------------------------------
def _native_path(K, x, out_dtype, tm, lm_pad, precision, vmem_limit_bytes):
    """(tm, L) @ (L, D) per (row-panel, batch) grid point.  The K row panel is
    resident across the inner batch axis; x[b] / out tiles stream."""
    B, L, D = x.shape
    Kp = K if lm_pad == L else jnp.pad(K, ((0, lm_pad - L), (0, 0)))
    y = pl.pallas_call(
        functools.partial(_matmul_kernel, precision=precision),
        out_shape=jax.ShapeDtypeStruct((B, lm_pad, D), out_dtype),
        grid_spec=pltpu.PrefetchScalarGridSpec(
            num_scalar_prefetch=0,
            grid=(lm_pad // tm, B),
            in_specs=[
                pl.BlockSpec((tm, L), lambda i, b: (i, 0)),          # K row panel
                pl.BlockSpec((None, L, D), lambda i, b: (b, 0, 0)),  # x[b]
            ],
            out_specs=pl.BlockSpec((None, tm, D), lambda i, b: (b, i, 0)),
        ),
        compiler_params=pltpu.CompilerParams(
            dimension_semantics=("parallel", "parallel"),
            vmem_limit_bytes=vmem_limit_bytes,
        ),
    )(Kp, x)
    return y if lm_pad == L else y[:, :L, :]


def _flipped_path(K, x, out_dtype, precision, vmem_limit_bytes):
    """B*D < 128:  y[b]^T = x[b]^T @ K^T with (b, d) folded into sublanes so
    the output's lane dim is L (unmasked stores, full MXU width)."""
    B, L, D = x.shape
    N = B * D
    xt = jnp.transpose(x, (0, 2, 1)).reshape(N, L)
    Kt = jnp.transpose(K)
    y = pl.pallas_call(
        functools.partial(_matmul_kernel, precision=precision),
        out_shape=jax.ShapeDtypeStruct((N, L), out_dtype),
        grid_spec=pltpu.PrefetchScalarGridSpec(
            num_scalar_prefetch=0,
            grid=(1,),
            in_specs=[
                pl.BlockSpec((N, L), lambda i: (0, 0)),
                pl.BlockSpec((L, L), lambda i: (0, 0)),
            ],
            out_specs=pl.BlockSpec((N, L), lambda i: (0, 0)),
        ),
        compiler_params=pltpu.CompilerParams(
            dimension_semantics=("arbitrary",),
            vmem_limit_bytes=vmem_limit_bytes,
        ),
    )(xt, Kt)
    return jnp.transpose(y.reshape(B, D, L), (0, 2, 1))


def _folded_path(K, x, out_dtype, tm_max, tn_max, tk_max, max_resident_seq,
                 budget, precision, vmem_limit_bytes):
    """General path: fold batch into lanes, x2 = (L, B*D), compute y = K @ x2
    with (M, N) tiling and K resident; fall back to an (M, N, K)-tiled
    accumulator matmul for very long sequences."""
    B, L, D = x.shape
    N = B * D
    eb = K.dtype.itemsize
    x2 = jnp.transpose(x, (1, 0, 2)).reshape(L, N)

    tm, lm_pad = _choose_tile(L, tm_max, 8)       # sublane dim: 8-granular
    tn, n_pad = _choose_tile(N, tn_max, 128)      # lane dim:    128-granular

    resident = (L <= max_resident_seq
                and 2 * (tm * L + L * tn + tm * tn) * eb <= budget)

    if resident:
        m_blocks, n_blocks = lm_pad // tm, n_pad // tn
        # Expose >= 2 parallel output tiles so v7x's two TensorCores both work.
        if (m_blocks == 1 and n_blocks == 1 and N % 256 == 0
                and L * N * eb >= (2 << 20)):
            tn, n_blocks = N // 2, 2

        Kp = K if lm_pad == L else jnp.pad(K, ((0, lm_pad - L), (0, 0)))
        x2p = x2 if n_pad == N else jnp.pad(x2, ((0, 0), (0, n_pad - N)))
        # TODO(synk): pipeline_mode=pl.Buffered(3) on the x2 spec if profiling
        # still shows exposed X DMA on v6e.
        y = pl.pallas_call(
            functools.partial(_matmul_kernel, precision=precision),
            out_shape=jax.ShapeDtypeStruct((lm_pad, n_pad), out_dtype),
            grid_spec=pltpu.PrefetchScalarGridSpec(
                num_scalar_prefetch=0,
                # x2 column panels stream exactly once (outer axis); only the
                # small K row panels are re-read per column panel.
                grid=(n_blocks, m_blocks),
                in_specs=[
                    pl.BlockSpec((tm, L), lambda j, i: (i, 0)),   # K row panel
                    pl.BlockSpec((L, tn), lambda j, i: (0, j)),   # x2 col panel
                ],
                out_specs=pl.BlockSpec((tm, tn), lambda j, i: (i, j)),
            ),
            compiler_params=pltpu.CompilerParams(
                dimension_semantics=("parallel", "parallel"),
                vmem_limit_bytes=vmem_limit_bytes,
            ),
        )(Kp, x2p)
    else:
        # Contraction-tiled fallback (very long sequences).
        tk, lk_pad = _choose_tile(L, tk_max, 128)
        Kp = K
        if (lm_pad, lk_pad) != (L, L):
            Kp = jnp.pad(K, ((0, lm_pad - L), (0, lk_pad - L)))
        x2p = x2
        if (lk_pad, n_pad) != (L, N):
            x2p = jnp.pad(x2, ((0, lk_pad - L), (0, n_pad - N)))
        y = pl.pallas_call(
            functools.partial(_matmul_acc_kernel, precision=precision),
            out_shape=jax.ShapeDtypeStruct((lm_pad, n_pad), out_dtype),
            grid_spec=pltpu.PrefetchScalarGridSpec(
                num_scalar_prefetch=0,
                grid=(lm_pad // tm, n_pad // tn, lk_pad // tk),
                in_specs=[
                    pl.BlockSpec((tm, tk), lambda i, j, k: (i, k)),
                    pl.BlockSpec((tk, tn), lambda i, j, k: (k, j)),
                ],
                out_specs=pl.BlockSpec((tm, tn), lambda i, j, k: (i, j)),
                scratch_shapes=[pltpu.VMEM((tm, tn), jnp.float32)],
            ),
            compiler_params=pltpu.CompilerParams(
                dimension_semantics=("parallel", "parallel", "arbitrary"),
                vmem_limit_bytes=vmem_limit_bytes,
            ),
        )(Kp, x2p)

    y = y[:L, :N]
    return jnp.transpose(y.reshape(L, B, D), (1, 0, 2))


# ----------------------------------------------------------------------------
# Public wrapper (forward pass of MovingAvgTime)
# ----------------------------------------------------------------------------
def moving_avg_time(
    K: jax.Array,
    x: jax.Array,
    *,
    compute_dtype=None,                   # e.g. jnp.bfloat16 for ~3x MXU rate
    precision=lax.Precision.HIGHEST,      # exact parity with torch f32 matmul
    tm_max: int = 512,
    tn_max: int = 1024,
    tk_max: int = 512,
    max_resident_seq: int = 2048,
    vmem_limit_bytes: int = 48 * 1024 * 1024,   # safe on v7x (64 MiB / TC)
) -> jax.Array:
    """out[b] = K @ x[b] with K: (L, L), x: (B, L, D) -> (B, L, D)."""
    B, L, D = x.shape
    if K.shape != (L, L):
        raise ValueError(f"K must be ({L}, {L}), got {K.shape}")
    out_dtype = x.dtype
    if compute_dtype is not None:
        K = K.astype(compute_dtype)
        x = x.astype(compute_dtype)
    eb = K.dtype.itemsize
    N = B * D
    budget = (3 * vmem_limit_bytes) // 4    # leave VMEM headroom

    # Path A: native (B, L, D) layout — no wrapper transposes — when D is
    # already lane-dense and the resident-K working set fits VMEM.
    if D >= 128:
        tm, lm_pad = _choose_tile(L, tm_max, 8)
        if 2 * (tm * L + L * D + tm * D) * eb <= budget:
            return _native_path(K, x, out_dtype, tm, lm_pad,
                                precision, vmem_limit_bytes)

    # Path B: tiny folded width (B*D < 128) -> flip so lanes = L.
    if N < 128 and 2 * (2 * N * L + L * L) * eb <= budget:
        return _flipped_path(K, x, out_dtype, precision, vmem_limit_bytes)

    # Path C: general fold-batch-into-lanes tiled matmul.
    return _folded_path(K, x, out_dtype, tm_max, tn_max, tk_max,
                        max_resident_seq, budget, precision, vmem_limit_bytes)


class MovingAvgTime:
    """JAX/Pallas port of the PyTorch MovingAvgTime module (forward pass)."""

    def __init__(self, kernel_size: int, seq_length: int, stride: int = 1):
        self.kernel_size = kernel_size
        self.seq_length = seq_length
        self.K = jnp.asarray(make_moving_avg_K(kernel_size, seq_length, stride))

    def __call__(self, x: jax.Array, **kwargs) -> jax.Array:
        assert x.shape[1] == self.seq_length
        return moving_avg_time(self.K, x, **kwargs)


# ----------------------------------------------------------------------------
# Demo / correctness check
# ----------------------------------------------------------------------------
if __name__ == "__main__":
    def _check(B, L, D, kernel_size, stride, key, tol=5e-3, **kwargs):
        mat = MovingAvgTime(kernel_size, L, stride)
        x = jax.random.normal(key, (B, L, D), dtype=jnp.float32)
        out = jax.block_until_ready(mat(x, **kwargs))
        ref = jnp.einsum("ls,bsd->bld", mat.K, x, precision=lax.Precision.HIGHEST)
        # Tolerance accommodates MXU pass-count differences across precisions /
        # generations while still catching any tiling / padding / indexing bug.
        np.testing.assert_allclose(np.asarray(out), np.asarray(ref),
                                   rtol=tol, atol=tol)

    key = jax.random.PRNGKey(0)
    k1, k2, k3, k4, k5 = jax.random.split(key, 5)

    # Path A: native (B, L, D) layout; M-row-panel tiling + K row padding.
    _check(B=2, L=128, D=128, kernel_size=3, stride=1, key=k1, tm_max=48)
    # Path B: B*D < 128 -> flipped orientation (lanes = L); linear-interp K.
    _check(B=2, L=16, D=8, kernel_size=5, stride=2, key=k2)
    # Path C: batch folded into lanes, resident-K single-shot matmul.
    _check(B=8, L=16, D=32, kernel_size=4, stride=1, key=k3)
    # Path C fallback: contraction tiled over grid axis 2 (forced at small L).
    _check(B=4, L=160, D=32, kernel_size=25, stride=1, key=k4,
           max_resident_seq=0, tk_max=128)
    # Optional bf16 compute (f32 accumulation kept) — looser tolerance.
    _check(B=8, L=16, D=32, kernel_size=4, stride=1, key=k5, tol=5e-2,
           compute_dtype=jnp.bfloat16, precision=lax.Precision.DEFAULT)

    print("KERNEL_OK")
</pallas_src>

<mosaic_0001>
module attributes {stable_mosaic.version = 11 : i64} {
  func.func @_matmul_kernel(%arg0: i32, %arg1: i32, %arg2: memref<48x128xf32, #tpu.memory_space<vmem>>, %arg3: memref<1x128x128xf32, #tpu.memory_space<vmem>>, %arg4: memref<1x48x128xf32, #tpu.memory_space<vmem>>) attributes {dimension_semantics = [#tpu.dimension_semantics<parallel>, #tpu.dimension_semantics<parallel>], iteration_bounds = array<i64: 3, 2>, scalar_prefetch = 0 : i64, scratch_operands = 0 : i64, tpu.core_type = #tpu.core_type<tc>, window_params = [{transform_indices = @transform_0, window_bounds = array<i64: 48, 128>}, {transform_indices = @transform_1, window_bounds = array<i64: 1, 128, 128>}, {transform_indices = @transform_2, window_bounds = array<i64: 1, 48, 128>}]} {
    %c0 = arith.constant 0 : index
    %c0_0 = arith.constant 0 : index
    %0 = vector.load %arg2[%c0, %c0_0] : memref<48x128xf32, #tpu.memory_space<vmem>>, vector<48x128xf32>
    %c0_1 = arith.constant 0 : index
    %c0_2 = arith.constant 0 : index
    %c0_3 = arith.constant 0 : index
    %1 = vector.load %arg3[%c0_1, %c0_2, %c0_3] : memref<1x128x128xf32, #tpu.memory_space<vmem>>, vector<1x128x128xf32>
    %2 = vector.shape_cast %1 : vector<1x128x128xf32> to vector<128x128xf32>
    %cst = arith.constant dense<0.000000e+00> : vector<48x128xf32>
    %3 = tpu.matmul %0, %2, %cst {dimension_numbers = #tpu.dot_dimension_numbers<[1], [0], [0], [1], [0, 0, 1, 1], [], []>, precision = #tpu.contract_precision<fp32>} : vector<48x128xf32>, vector<128x128xf32>, vector<48x128xf32> -> vector<48x128xf32>
    %c0_4 = arith.constant 0 : index
    %c0_5 = arith.constant 0 : index
    %c0_6 = arith.constant 0 : index
    %4 = vector.load %arg4[%c0_4, %c0_5, %c0_6] : memref<1x48x128xf32, #tpu.memory_space<vmem>>, vector<1x48x128xf32>
    %5 = vector.shape_cast %4 : vector<1x48x128xf32> to vector<48x128xf32>
    %6 = vector.shape_cast %3 : vector<48x128xf32> to vector<1x48x128xf32>
    tpu.vector_store %arg4[%c0_4, %c0_5, %c0_6], %6 {strides = array<i32>} : memref<1x48x128xf32, #tpu.memory_space<vmem>>, vector<1x48x128xf32>,
    return
  }
  func.func @transform_0(%arg0: i32, %arg1: i32) -> (i32, i32) {
    %c0_i32 = arith.constant 0 : i32
    %c0_i32_0 = arith.constant 0 : i32
    return %arg0, %c0_i32 : i32, i32
  }
  func.func @transform_1(%arg0: i32, %arg1: i32) -> (i32, i32, i32) {
    %c0_i32 = arith.constant 0 : i32
    %c0_i32_0 = arith.constant 0 : i32
    %c0_i32_1 = arith.constant 0 : i32
    return %arg1, %c0_i32, %c0_i32_0 : i32, i32, i32
  }
  func.func @transform_2(%arg0: i32, %arg1: i32) -> (i32, i32, i32) {
    %c0_i32 = arith.constant 0 : i32
    %c0_i32_0 = arith.constant 0 : i32
    return %arg1, %arg0, %c0_i32 : i32, i32, i32
  }
}

</mosaic_0001>

<bundles_post_ra>
// kernel: tpu_custom_call.1
= control target key start
LH: loop header
LB: loop body
LE: loop exit
PB: predicated region body
PF: predicated region fallthrough
CT: control target
= control target key end

     0   :  { %s2903_s0 = inlined_call_operand.hbm [shape: f32[144,128], index: 0, kind: input, shape index: {}]   ;;  %s2904_s1 = inlined_call_operand.hbm [shape: f32[2,128,128], index: 1, kind: input, shape index: {}]   ;;  %s2905_s2 = inlined_call_operand.hbm [shape: f32[2,144,128], index: 2, kind: output, shape index: {}]  }
   0x1   :  { %2932 = sst [smem:[#allocation21_spill]] %s2903_s0 }
   0x2   :  { %7 = vsyncpa [#allocation3], 0 }
   0x3   :  { %9 = vsyncpa [#allocation3 + $0x1], 0 }
   0x4   :  { %10 = vsyncpa [#allocation6], 0 }
   0x5   :  { %12 = vsyncpa [#allocation6 + $0x1], 0 }
   0x6   :  { %13 = vsyncpa [#allocation4], 0 }
   0x7   :  { %15 = vsyncpa [#allocation4 + $0x1], 0  ;;  %s2216_s9 = smov 0   ;;  %s2218_s10 = smov 0  }
   0x8   :  { %s2220_s11 = smov 0   ;;  %s2222_s12 = smov 0  }
   0x9   :  { %s2224_s13 = smov 0   ;;  %s2226_s14 = smov 0  }
   0xa   :  { %s2228_s15 = smov 0   ;;  %s2230_s16 = smov 0  }
   0xb   :  { %s2232_s17 = smov 0   ;;  %s2234_s18 = smov 0  }
   0xc   :  { %s2236_s19 = smov 0   ;;  %s2238_s20 = smov 0  }
   0xd   :  { %s2240_s21 = smov 0   ;;  %s2242_s22 = smov 0  }
   0xe LB: > { %2933 = sst [smem:[#allocation11_spill]] %s2184_s20  ;;  %s2906_s23 = sadd.s32 4294967295, %s2192_s22   ;;  %s2192_s22 = sphi %s2242_s22, %s21_s22   ;;  %s2188_s21 = sphi %s2240_s21, %s2979_s21   ;;  %s2184_s20 = sphi %s2238_s20, %s2990_s20   ;;  %s2180_s19 = sphi %s2236_s19, %s2977_s19   ;;  %s2176_s18 = sphi %s2234_s18, %s2976_s18   ;;  %s2172_s17 = sphi %s2232_s17, %s2989_s17   ;;  %s2168_s16 = sphi %s2230_s16, %s2988_s16   ;;  %s2164_s15 = sphi %s2228_s15, %s2987_s15   ;;  %s2160_s14 = sphi %s2226_s14, %s2986_s14   ;;  %s2156_s13 = sphi %s2224_s13, %s2985_s13   ;;  %s2152_s12 = sphi %s2222_s12, %s2984_s12   ;;  %s2148_s11 = sphi %s2220_s11, %s2983_s11   ;;  %s2144_s10 = sphi %s2218_s10, %s2982_s10   ;;  %s2140_s9 = sphi %s2216_s9, %s2981_s9  }
   0xf   : > { %2934 = sst [smem:[#allocation12_spill]] %s2188_s21  ;;  %p47_p0 = scmp.ne.s32.totalorder %s2172_s17, %s2168_s16 }
  0x10   : > { %p2908_p1 = scmp.eq.s32.totalorder %s2192_s22, 0  ;;  %p53_p2 = scmp.ne.s32.totalorder %s2168_s16, %s2164_s15 }
  0x11   : > { %p2293_p3 = scmp.eq.s32.totalorder %s2906_s23, 0  ;;  %p2907_p6 = scmp.lt.s32.totalorder %s2192_s22, 6 }
  0x12   : > { %p49_p4 = por %p2908_p1, %p47_p0  ;;  %s131_s28 = sand.u32 1, %s2172_s17  }
  0x13   : > { %p2301_p5 = por %p2293_p3, %p53_p2  ;;  %s1241_s29 = smul.u32 768, %s2188_s21 }
  0x14   : > { %s1843_s30 = smul.u32 48, %s131_s28  ;;  %s2937_s0 = sld [smem:[#allocation21_spill]] }
  0x15   : > { %s2936_s27 = scalar_select %p2301_p5, 1, 0 }
  0x16   : > { %p2315_p7 = pnand %p2907_p6, %p49_p4  ;;  %s135_s7 = scalar_lea.vmem [#allocation2], %s1843_s30 }
  0x17   : > { %s142_s8 = sshll.u32 %s135_s7, 4  ;;  %s2321_s15 = scalar_lea.sflag [#allocation3], %s131_s28  ;;  %s2319_s8 = int_to_ptr.vmem [resolvable:$true] %s142_s8 }
  0x18   : > { %p1984_p9 = pneg %p2315_p7 }
  0x1a   : > { %s2311_s5 = scalar_lea.hbm %s2937_s0, %s1241_s29  ;;  %s1987_s25 = scalar_lea.hbm %s2937_s0, 2304 }
  0x1b   : > { %s1982_s3 = scalar_lea.hbm %s2311_s5, 768  ;;  %p1988_p12 = scmp.lt.u32.totalorder %s2311_s5, %s2937_s0 }
  0x1c   : > { %p1983_p8 = scmp.ne.s32.totalorder %s2311_s5, %s1982_s3  ;;  %p1989_p13 = scmp.lt.u32.totalorder %s1987_s25, %s1982_s3 }
  0x1d   : > { %p1991_p2 = scmp.lt.u32.totalorder %s1982_s3, %s2311_s5 }
  0x1e   : > { %p1985_p10 = pnand %p1984_p9, %p1983_p8  ;;  %p1990_p0 = por %p1989_p13, %p1988_p12 }
  0x20   : > { %p1986_p11 = pneg %p1985_p10  ;;  %p1992_p4 = por %p1991_p2, %p1990_p0 }
  0x22   : > { %p1993_p6 = pnand %p1992_p4, %p1986_p11 }
  0x24   : > { %1996 = shalt.err (!%p1993_p6)
}
  0x25   : > { %s1997_s28 = scalar_lea.vmem %s2319_s8, 768  ;;  %s2194_s30 = smov [#allocation2]  }
  0x26   : > { %p1998_p8 = scmp.ne.s32.totalorder %s2319_s8, %s1997_s28  ;;  %s2002_s7 = sshll.u32 %s2194_s30, 4  ;;  %s2003_s7 = int_to_ptr.vmem [resolvable:$false] %s2002_s7 }
  0x27   : > { %s2004_s23 = scalar_lea.vmem %s2003_s7, 1536  ;;  %p2005_p5 = scmp.lt.s32.totalorder %s2319_s8, %s2003_s7 }
  0x28   : > { %p2000_p10 = pnand %p1998_p8, %p1984_p9  ;;  %p2006_p12 = scmp.lt.s32.totalorder %s2004_s23, %s1997_s28 }
  0x2a   : > { %p2001_p1 = pneg %p2000_p10  ;;  %p2007_p13 = por %p2006_p12, %p2005_p5 }
  0x2c   : > { %p2008_p0 = pnand %p2007_p13, %p2001_p1 }
  0x2e   : > { %2011 = shalt.err (!%p2008_p0)
}
  0x2f   : > { %s2910_s24 = smov 128   ;;  %s2911_s25 = smov 8  }
  0x30   : > { %1856 = dma.hbm_to_vmem [thread:$0]  (!%p2315_p7), %s2311_s5, 768, %s2319_s8, %s2321_s15, %s2910_s24, %s2910_s24, %s2911_s25  }
  0x31   : > { %p1236_p1 = scmp.ge.s32.totalorder %s2192_s22, 1  ;;  %p171_p5 = scmp.lt.s32.totalorder %s2192_s22, 7 }
  0x32   : > { %s2939_s3 = sadd.s32 4294967295, %s2192_s22   ;;  %s1229_s6 = sadd.s32 4294967294, %s2192_s22  }
  0x33   : > { %p2356_p6 = scmp.eq.s32.totalorder %s2939_s3, 5  ;;  %p2360_p9 = pnand %p1236_p1, %p171_p5 }
  0x34   : > { %s30_s28 = sadd.s32 1, %s2184_s20  ;;  %s66_s5 = sadd.s32 1, %s2160_s14 }
  0x35   : > { %p31_p7 = scmp.ge.s32.totalorder %s30_s28, 2  ;;  %p73_p11 = scmp.ne.s32.totalorder %s2160_s14, %s2156_s13 }
  0x36   : > { %p79_p2 = scmp.ne.s32.totalorder %s2156_s13, %s2152_s12  ;;  %s2943_s8 = sadd.s32 1, %s2188_s21 }
  0x37   : > { %s2992_s28 = smov (%p31_p7, %s30_s28), 0  ;;  %s2994_s8 = smov (!%p31_p7, %s2943_s8), %s2188_s21 }
  0x38   : > { %2942 = sst [smem:[#allocation13_spill]] %s2992_s28  ;;  %s63_s15 = ssub.s32 %s2184_s20, %s2992_s28 }
  0x39   : > { %s94_s30 = sadd.s32 1, %s2148_s11  ;;  %p35_p4 = scmp.ge.s32.totalorder %s2994_s8, 3 }
  0x3a   : > { %p64_p8 = scmp.eq.s32.totalorder %s63_s15, 0  ;;  %p2381_p10 = por %p79_p2, %p2293_p3 }
  0x3b   : > { %p104_p12 = scmp.ne.s32.totalorder %s2148_s11, %s2144_s10  ;;  %s2996_s8 = smov (%p35_p4, %s2994_s8), 0 }
  0x3c   : > { %s2944_s12 = scalar_select %p2381_p10, 1, 0 }
  0x3d   : > { %2945 = sst [smem:[#allocation14_spill]] %s2996_s8  ;;  %s37_s23 = ssub.s32 %s2188_s21, %s2996_s8 }
  0x3e   : > { %s2390_s7 = scalar_select %p64_p8, %s2160_s14, %s66_s5  }
  0x3f   : > { %p2396_p13 = por %p2356_p6, %p104_p12  ;;  %p38_p0 = scmp.eq.s32.totalorder %s37_s23, 0 }
  0x40   : > { %s91_s26 = sor.u32 %s63_s15, %s37_s23  ;;  %p110_p1 = scmp.ne.s32.totalorder %s2144_s10, %s2140_s9 }
  0x41   : > { %s2946_s3 = scalar_select %p2396_p13, 1, 0 }
  0x42   : > { %p92_p3 = scmp.eq.s32.totalorder %s91_s26, 0  ;;  %s2947_s24 = sadd.s32 1, %s2172_s17 }
  0x43   : > { %s2405_s25 = scalar_select %p38_p0, %s2172_s17, %s2947_s24  }
  0x44   : > { %s2408_s0 = scalar_select %p92_p3, %s2148_s11, %s94_s30  }
  0x45   : > { %p111_p5 = scmp.eq.s32.totalorder %s1229_s6, 5  ;;  %s152_s28 = sand.u32 1, %s2160_s14  }
  0x46   : > { %p2948_p7 = scmp.eq.s32.totalorder %s2192_s22, 0  ;;  %s1233_s29 = sshll.u32 %s152_s28, 7 }
  0x47   : > { %p2416_p6 = por %p111_p5, %p110_p1  ;;  %s1242_s8 = sshll.u32 %s2184_s20, 11 }
  0x48   : > { %p75_p2 = por %p73_p11, %p2948_p7  ;;  %s156_s21 = scalar_lea.vmem [#allocation5], %s1233_s29 }
  0x49   : > { %s2949_s5 = scalar_select %p2416_p6, 1, 0 }
  0x4a   : > { %s163_s15 = sshll.u32 %s156_s21, 4  ;;  %s2424_s24 = scalar_lea.hbm %s2904_s1, %s1242_s8  ;;  %s2426_s15 = int_to_ptr.vmem [resolvable:$true] %s163_s15 }
  0x4b   : > { %p2950_p11 = scmp.lt.s32.totalorder %s2192_s22, 6  ;;  %s2434_s30 = scalar_lea.sflag [#allocation6], %s152_s28 }
  0x4c   : > { %s2012_s21 = scalar_lea.hbm %s2424_s24, 2048  ;;  %s2017_s23 = scalar_lea.hbm %s2904_s1, 4096 }
  0x4d   : > { %p2430_p4 = pnand %p2950_p11, %p75_p2  ;;  %p2013_p8 = scmp.ne.s32.totalorder %s2424_s24, %s2012_s21 }
  0x4e   : > { %p2018_p1 = scmp.lt.u32.totalorder %s2424_s24, %s2904_s1  ;;  %p2019_p5 = scmp.lt.u32.totalorder %s2017_s23, %s2012_s21 }
  0x4f   : > { %p2014_p12 = pneg %p2430_p4  ;;  %p2021_p2 = scmp.lt.u32.totalorder %s2012_s21, %s2424_s24 }
  0x50   : > { %p2020_p7 = por %p2019_p5, %p2018_p1 }
  0x51   : > { %p2015_p0 = pnand %p2014_p12, %p2013_p8 }
  0x52   : > { %p2022_p11 = por %p2021_p2, %p2020_p7 }
  0x53   : > { %p2016_p3 = pneg %p2015_p0 }
  0x55   : > { %p2023_p6 = pnand %p2022_p11, %p2016_p3 }
  0x57   : > { %2026 = shalt.err (!%p2023_p6)
}
  0x58   : > { %s2027_s28 = scalar_lea.vmem %s2426_s15, 2048  ;;  %s2197_s8 = smov [#allocation5]  }
  0x59   : > { %p2028_p8 = scmp.ne.s32.totalorder %s2426_s15, %s2027_s28  ;;  %s2032_s29 = sshll.u32 %s2197_s8, 4  ;;  %s2033_s29 = int_to_ptr.vmem [resolvable:$false] %s2032_s29 }
  0x5a   : > { %s2034_s20 = scalar_lea.vmem %s2033_s29, 4096  ;;  %p2035_p10 = scmp.lt.s32.totalorder %s2426_s15, %s2033_s29 }
  0x5b   : > { %p2030_p0 = pnand %p2028_p8, %p2014_p12  ;;  %p2036_p1 = scmp.lt.s32.totalorder %s2034_s20, %s2027_s28 }
  0x5d   : > { %p2031_p13 = pneg %p2030_p0  ;;  %p2037_p5 = por %p2036_p1, %p2035_p10 }
  0x5f   : > { %p2038_p7 = pnand %p2037_p5, %p2031_p13 }
  0x61   : > { %2041 = shalt.err (!%p2038_p7)
}
  0x62   : > { %s2952_s21 = smov 8   ;;  %s2953_s23 = smov 128  }
  0x63   : > { %1859 = dma.hbm_to_vmem [thread:$0]  (!%p2430_p4), %s2424_s24, 2048, %s2426_s15, %s2434_s30, %s2953_s23, %s2953_s23, %s2952_s21  }
  0x64   : > { %175 = sbr.rel (%p2360_p9) target bundleno = 455 (0x1c7), region = 28 }
  0x6b   : > { %s177_s26 = sand.u32 1, %s2168_s16   ;;  %p2954_p10 = scmp.ne.s32.totalorder %s2936_s27, 0 }
  0x6c   : > { %s1844_s8 = smul.u32 48, %s177_s26  ;;  %s178_s28 = scalar_lea.sflag [#allocation3], %s177_s26 }
  0x6e   : > { %s2468_s29 = scalar_lea.vmem [#allocation2], %s1844_s8 }
  0x6f   : > { %2127 = dma.done.wait (%p2954_p10), %s178_s28, 768  }
  0x70   : > { %2129 = vsyncadd (%p2954_p10), %s178_s28, 4294966528  ;;  %s186_s6 = sand.u32 1, %s2156_s13   ;;  %p2955_p9 = scmp.ne.s32.totalorder %s2944_s12, 0 }
  0x71   : > { %s1237_s20 = sshll.u32 %s186_s6, 7  ;;  %s187_s15 = scalar_lea.sflag [#allocation6], %s186_s6 }
  0x72   : > { %s2475_s24 = scalar_lea.vmem [#allocation5], %s1237_s20 }
  0x73   : > { %2131 = dma.done.wait (%p2955_p9), %s187_s15, 2048  }
  0x74   : > { %2133 = vsyncadd (%p2955_p9), %s187_s15, 4294965248  ;;  %v224_v0 = vld [vmem:[%s2475_s24] sm:$0xff]  ;;  %v225_v1 = vld [vmem:[%s2475_s24 + $0x8] sm:$0xff]  ;;  %s213_s27 = sand.u32 1, %s2144_s10   ;;  %s1110_s12 = smul.u32 6, %s2180_s19 }
  0x75   : > { %v226_v2 = vld [vmem:[%s2475_s24 + $0x10] sm:$0xff]  ;;  %v241_v3 = vand.u32 4294901760, %v224_v0  ;;  %v244_v4 = vand.u32 4294901760, %v225_v1  ;;  %v2485_v5 = vld [vmem:[%s2475_s24 + $0x18] sm:$0xff]  ;;  %v2488_v7 = vld [vmem:[%s2475_s24 + $0x20] sm:$0xff]  ;;  %s1845_s4 = smul.u32 48, %s213_s27 }
  0x76   : > { %v247_v6 = vand.u32 4294901760, %v226_v2  ;;  %v2491_v8 = vld [vmem:[%s2475_s24 + $0x28] sm:$0xff]  ;;  %v250_v9 = vand.u32 4294901760, %v2485_v5  ;;  %v253_v11 = vand.u32 4294901760, %v2488_v7  ;;  %v2501_v14 = vld [vmem:[%s2475_s24 + $0x30] sm:$0xff]  ;;  %v2504_v15 = vld [vmem:[%s2475_s24 + $0x38] sm:$0xff] }
  0x77   : > { %v2494_v10 = vpack.c.bf16 %v244_v4, %v241_v3  ;;  %v256_v12 = vand.u32 4294901760, %v2491_v8  ;;  %v218_v16 = vld [vmem:[%s2468_s29] sm:$0xff]  ;;  %v259_v19 = vand.u32 4294901760, %v2501_v14  ;;  %v262_v20 = vand.u32 4294901760, %v2504_v15  ;;  %v2527_v22 = vld [vmem:[%s2475_s24 + $0x48] sm:$0xff]  ;;  %v2549_v29 = vld [vmem:[%s2475_s24 + $0x58] sm:$0xff] }
  0x78   : > { %v2498_v13 = vpack.c.bf16 %v250_v9, %v247_v6  ;;  %v2511_v17 = vand.u32 4294901760, %v218_v16  ;;  %v2524_v21 = vld [vmem:[%s2475_s24 + $0x40] sm:$0xff]  ;;  %v268_v27 = vand.u32 4294901760, %v2527_v22  ;;  %v2546_v28 = vld [vmem:[%s2475_s24 + $0x50] sm:$0xff]  ;;  %v219_v31 = vld [vmem:[%s2468_s29 + $0x8] sm:$0xff]  ;;  %v2922_v35 = vand.u32 4294901760, %v2549_v29 }
  0x79   : > { %1622 = vmatprep.subr.bf16.mxu1 %v2494_v10  ;;  %1718 = vmatprep.subr.bf16.mxu0 %v2494_v10  ;;  %v2519_v18 = vpack.c.bf16 %v256_v12, %v253_v11  ;;  %v2541_v25 = vpack.c.bf16 %v262_v20, %v259_v19  ;;  %v265_v26 = vand.u32 4294901760, %v2524_v21  ;;  %v271_v32 = vand.u32 4294901760, %v2546_v28  ;;  %v2566_v36 = vld [vmem:[%s2475_s24 + $0x60] sm:$0xff]  ;;  %v2569_v37 = vld [vmem:[%s2475_s24 + $0x68] sm:$0xff]  ;;  %v2583_v44 = vld [vmem:[%s2475_s24 + $0x70] sm:$0xff]  ;;  %s1846_s30 = smul.u32 18, %s2176_s18 }
  0x7a   : > { %1624 = vmatpush3.bf16.msra.mxu1 %v2494_v10  ;;  %1720 = vmatpush3.bf16.msra.mxu0 %v2494_v10  ;;  %v2530_v23 = vsub.f32 %v218_v16, %v2511_v17  ;;  %v2571_v38 = vsub.f32 %v224_v0, %v241_v3  ;;  %v2573_v39 = vsub.f32 %v225_v1, %v244_v4  ;;  %v2575_v40 = vand.u32 4294901760, %v219_v31  ;;  %v220_v41 = vld [vmem:[%s2468_s29 + $0x10] sm:$0xff]  ;;  %v2586_v45 = vld [vmem:[%s2475_s24 + $0x78] sm:$0xff]  ;;  %v222_v0 = vld [vmem:[%s2468_s29 + $0x20] sm:$0xff]  ;;  %s215_s21 = scalar_lea.vmem [#allocation7], %s1845_s4  ;;  %p2973_p6 = scmp.ne.s32.totalorder %s2946_s3, 0 }
  0x7b   : > { %1626 = vmatprep.subr.bf16.mxu1 %v2498_v13  ;;  %1722 = vmatprep.subr.bf16.mxu0 %v2498_v13  ;;  %v2562_v34 = vpack.c.bf16 %v268_v27, %v265_v26  ;;  %v2921_v42 = vand.u32 4294901760, %v2566_v36  ;;  %v2920_v43 = vand.u32 4294901760, %v2569_v37  ;;  %v2588_v46 = vsub.f32 %v226_v2, %v247_v6  ;;  %v221_v53 = vld [vmem:[%s2468_s29 + $0x18] sm:$0xff]  ;;  %s1115_s23 = sadd.s32 %s1846_s30, %s1110_s12  ;;  %s1118_s26 = sshll.u32 %s215_s21, 4  ;;  %s2818_s26 = int_to_ptr.vmem [resolvable:$true] %s1118_s26 }
  0x7c   : > { %v323_v24 = vand.u32 4294901760, %v2530_v23  ;;  %v2596_v47 = vpack.c.bf16 %v2922_v35, %v271_v32  ;;  %v384_v48 = vand.u32 4294901760, %v2571_v38  ;;  %v391_v49 = vand.u32 4294901760, %v2573_v39  ;;  %s1238_s19 = sshll.u32 %s1115_s23, 7  ;;  %s2042_s6 = scalar_lea.vmem %s2818_s26, 768 }
  0x7d   : > { %v2601_v50 = vsub.f32 %v2485_v5, %v250_v9  ;;  %v2604_v51 = vsub.f32 %v219_v31, %v2575_v40  ;;  %v2606_v52 = vand.u32 4294901760, %v220_v41  ;;  %v2919_v54 = vand.u32 4294901760, %v2583_v44  ;;  %s2823_s28 = scalar_lea.hbm %s2905_s2, %s1238_s19  ;;  %p2043_p13 = scmp.ne.s32.totalorder %s2818_s26, %s2042_s6 }
  0x7e   : > { %1628 = vmatpush3.bf16.msra.mxu1 %v2498_v13  ;;  %1724 = vmatpush3.bf16.msra.mxu0 %v2498_v13  ;;  %v324_v30 = vsub.f32 %v2530_v23, %v323_v24  ;;  %2956 = vst [vmem:[#allocation15_spill] sm:$0xff] %v2596_v47  ;;  %v2918_v55 = vand.u32 4294901760, %v2586_v45  ;;  %v2617_v56 = vpack.c.bf16 %v2920_v43, %v2921_v42  ;;  %v398_v57 = vand.u32 4294901760, %v2588_v46  ;;  %s2198_s20 = smov [#allocation7]  }
  0x7f   : > { %1630 = vmatprep.subr.bf16.mxu1 %v2519_v18  ;;  %1726 = vmatprep.subr.bf16.mxu0 %v2519_v18  ;;  %2957 = vst [vmem:[#allocation16_spill] sm:$0xff] %v2604_v51  ;;  %v2623_v58 = vsub.f32 %v2488_v7, %v253_v11  ;;  %v2628_v59 = vsub.f32 %v2491_v8, %v256_v12  ;;  %v405_v62 = vand.u32 4294901760, %v2601_v50  ;;  %v2635_v63 = vand.u32 4294901760, %v221_v53  ;;  %p2044_p4 = pnand %p2043_p13, %p2973_p6  ;;  %s2046_s15 = sshll.u32 %s2198_s20, 4  ;;  %s2047_s15 = int_to_ptr.vmem [resolvable:$false] %s2046_s15 }
  0x80   : > { %1530 = vmatprep.mubr.f32.mxu0 %v323_v24  ;;  %v325_v33 = vand.u32 4294901760, %v324_v30  ;;  %2958 = vst [vmem:[#allocation17_spill] sm:$0xff] %v2617_v56  ;;  %v385_v60 = vsub.f32 %v2571_v38, %v384_v48  ;;  %v392_v61 = vsub.f32 %v2573_v39, %v391_v49  ;;  %v333_v1 = vand.u32 4294901760, %v2604_v51  ;;  %s2048_s24 = scalar_lea.vmem %s2047_s15, 1536  ;;  %p2049_p3 = scmp.lt.s32.totalorder %s2818_s26, %s2047_s15 }
  0x81   : > { %v2640_v2 = vsub.f32 %v220_v41, %v2606_v52  ;;  %v2646_v3 = vpack.c.bf16 %v2918_v55, %v2919_v54  ;;  %v2651_v4 = vsub.f32 %v2501_v14, %v259_v19  ;;  %v2654_v5 = vsub.f32 %v221_v53, %v2635_v63  ;;  %p2045_p12 = pneg %p2044_p4  ;;  %p2050_p2 = scmp.lt.s32.totalorder %s2048_s24, %s2042_s6 }
  0x82   : > { %1632 = vmatpush3.bf16.msra.mxu1 %v2519_v18  ;;  %1728 = vmatpush3.bf16.msra.mxu0 %v2519_v18  ;;  %v399_v6 = vsub.f32 %v2588_v46, %v398_v57  ;;  %v412_v7 = vand.u32 4294901760, %v2623_v58  ;;  %v2663_v8 = vsub.f32 %v2504_v15, %v262_v20  ;;  %v2665_v9 = vand.u32 4294901760, %v222_v0  ;;  %v223_v15 = vld [vmem:[%s2468_s29 + $0x28] sm:$0xff]  ;;  %s2827_s29 = scalar_lea.sflag [#allocation4], %s213_s27 }
  0x83   : > { %1634 = vmatprep.subr.bf16.mxu1 %v2541_v25  ;;  %1730 = vmatprep.subr.bf16.mxu0 %v2541_v25  ;;  %2959 = vst [vmem:[#allocation18_spill] sm:$0xff] %v2640_v2  ;;  %2960 = vst [vmem:[#allocation19_spill] sm:$0xff] %v2646_v3  ;;  %v386_v11 = vand.u32 4294901760, %v385_v60  ;;  %v393_v12 = vand.u32 4294901760, %v392_v61  ;;  %v406_v14 = vsub.f32 %v2601_v50, %v405_v62  ;;  %v419_v16 = vand.u32 4294901760, %v2628_v59  ;;  %p2051_p11 = por %p2050_p2, %p2049_p3 }
  0x84   : > { %1407 = vmatprep.mubr.f32.mxu1 %v325_v33  ;;  %2961 = vst [vmem:[#allocation20_spill] sm:$0xff] %v2654_v5  ;;  %v334_v19 = vsub.f32 %v2604_v51, %v333_v1  ;;  %v343_v24 = vand.u32 4294901760, %v2640_v2  ;;  %v2674_v30 = vsub.f32 %v222_v0, %v2665_v9  ;;  %v1749_v20 = vpack.c.bf16 %v391_v49, %v384_v48 }
  0x85   : > { %v426_v31 = vand.u32 4294901760, %v2651_v4  ;;  %v2681_v33 = vsub.f32 %v2524_v21, %v265_v26  ;;  %v353_v41 = vand.u32 4294901760, %v2654_v5  ;;  %v400_v53 = vand.u32 4294901760, %v399_v6  ;;  %p2052_p8 = pnand %p2051_p11, %p2045_p12 }
  0x86   : > { %1636 = vmatpush3.bf16.msra.mxu1 %v2541_v25  ;;  %1732 = vmatpush3.bf16.msra.mxu0 %v2541_v25  ;;  %v413_v60 = vsub.f32 %v2623_v58, %v412_v7  ;;  %v433_v61 = vand.u32 4294901760, %v2663_v8  ;;  %v2691_v48 = vsub.f32 %v2527_v22, %v268_v27  ;;  %v1653_v21 = vpack.c.bf16 %v393_v12, %v386_v11 }
  0x87   : > { %1638 = vmatprep.subr.bf16.mxu1 %v2562_v34  ;;  %1734 = vmatprep.subr.bf16.mxu0 %v2562_v34  ;;  %v407_v26 = vand.u32 4294901760, %v406_v14  ;;  %v420_v49 = vsub.f32 %v2628_v59, %v419_v16  ;;  %v2696_v0 = vand.u32 4294901760, %v223_v15  ;;  %v335_v6 = vand.u32 4294901760, %v334_v19 }
  0x88   : > { %v1753_v55 = vpack.c.bf16 %v405_v62, %v398_v57  ;;  %v344_v54 = vsub.f32 %v2640_v2, %v343_v24  ;;  %v363_v43 = vand.u32 4294901760, %v2674_v30  ;;  %v427_v42 = vsub.f32 %v2651_v4, %v426_v31 }
  0x89   : > { %v440_v22 = vand.u32 4294901760, %v2681_v33  ;;  %v354_v27 = vsub.f32 %v2654_v5, %v353_v41  ;;  %v2704_v35 = vsub.f32 %v223_v15, %v2696_v0  ;;  %v434_v11 = vsub.f32 %v2663_v8, %v433_v61 }
  0x8a   : > { %1640 = vmatpush3.bf16.msra.mxu1 %v2562_v34  ;;  %1736 = vmatpush3.bf16.msra.mxu0 %v2562_v34  ;;  %v447_v57 = vand.u32 4294901760, %v2691_v48  ;;  %v2713_v62 = vsub.f32 %v2546_v28, %v271_v32  ;;  %v2962_v12 = vand.u32 4294901760, %v2549_v29  ;;  %v1657_v19 = vpack.c.bf16 %v407_v26, %v400_v53 }
  0x8b   : > { %1642 = vmatprep.subr.bf16.mxu1 %v2596_v47  ;;  %1738 = vmatprep.subr.bf16.mxu0 %v2596_v47  ;;  %v414_v15 = vand.u32 4294901760, %v413_v60  ;;  %v421_v5 = vand.u32 4294901760, %v420_v49  ;;  %v373_v2 = vand.u32 4294901760, %v2704_v35  ;;  %v1757_v51 = vpack.c.bf16 %v419_v16, %v412_v7 }
  0x8c   : > { %v2718_v14 = vsub.f32 %v2549_v29, %v2962_v12  ;;  %v428_v28 = vand.u32 4294901760, %v427_v42  ;;  %v441_v32 = vsub.f32 %v2681_v33, %v440_v22  ;;  %v435_v12 = vand.u32 4294901760, %v434_v11 }
  0x8d   : > { %v374_v29 = vsub.f32 %v2704_v35, %v373_v2  ;;  %v448_v53 = vsub.f32 %v2691_v48, %v447_v57  ;;  %v454_v60 = vand.u32 4294901760, %v2713_v62  ;;  %v2964_v16 = vand.u32 4294901760, %v2569_v37 }
  0x8e   : > { %1644 = vmatpush3.bf16.msra.mxu1 %v2596_v47  ;;  %1740 = vmatpush3.bf16.msra.mxu0 %v2596_v47  ;;  %v355_v47 = vand.u32 4294901760, %v354_v27  ;;  %v461_v7 = vand.u32 4294901760, %v2718_v14  ;;  %v1761_v26 = vpack.c.bf16 %v433_v61, %v426_v31  ;;  %v442_v49 = vand.u32 4294901760, %v441_v32 }
  0x8f   : > { %1646 = vmatprep.subr.bf16.mxu1 %v2617_v56  ;;  %1742 = vmatprep.subr.bf16.mxu0 %v2617_v56  ;;  %v449_v27 = vand.u32 4294901760, %v448_v53 }
  0x90   : > { %v462_v11 = vsub.f32 %v2718_v14, %v461_v7 }
  0x91   : > { %v1669_v31 = vpack.c.bf16 %v449_v27, %v442_v49 }
  0x92   : > { %1648 = vmatpush3.bf16.msra.mxu1 %v2617_v56  ;;  %1744 = vmatpush3.bf16.msra.mxu0 %v2617_v56  ;;  %v364_v56 = vsub.f32 %v2674_v30, %v363_v43 }
  0x93   : > { %1650 = vmatprep.subr.bf16.mxu1 %v2646_v3  ;;  %1746 = vmatprep.subr.bf16.mxu0 %v2646_v3 }
  0x96   : > { %1652 = vmatpush3.bf16.msra.mxu1 %v2646_v3  ;;  %1748 = vmatpush3.bf16.msra.mxu0 %v2646_v3  ;;  %v345_v3 = vand.u32 4294901760, %v344_v54  ;;  %v1661_v54 = vpack.c.bf16 %v421_v5, %v414_v15  ;;  %v1665_v5 = vpack.c.bf16 %v435_v12, %v428_v28 }
  0x97   : > { %1654 = vmatprep.subr.bf16.mxu1 %v1653_v21  ;;  %1750 = vmatprep.subr.bf16.mxu0 %v1749_v20 }
  0x99   : > { %1408 = vmatmul.mubr.f32.vlgmr.msra.gmra.mrb[0].mxu1 %v335_v6  ;;  %1531 = vmatmul.mubr.f32.vlgmr.msra.gmra.mrb[0].mxu0 %v333_v1  ;;  %v2963_v1 = vand.u32 4294901760, %v2566_v36  ;;  %v375_v6 = vand.u32 4294901760, %v374_v29 }
  0x9a   : > { %1656 = vmatpush3.bf16.msra.mxu1 %v1653_v21  ;;  %1752 = vmatpush3.bf16.msra.mxu0 %v1749_v20  ;;  %v2735_v21 = vsub.f32 %v2569_v37, %v2964_v16  ;;  %v365_v20 = vand.u32 4294901760, %v364_v56  ;;  %v2965_v56 = vand.u32 4294901760, %v2583_v44  ;;  %v1689_v16 = vpack.c.bf16 %v2601_v50, %v2588_v46  ;;  %v2970_v46 = vld [vmem:[#allocation16_spill] sm:$0xff]  ;;  %v2971_v50 = vld [vmem:[#allocation18_spill] sm:$0xff] }
  0x9b   : > { %1658 = vmatprep.subr.bf16.mxu1 %v1657_v19  ;;  %1754 = vmatprep.subr.bf16.mxu0 %v1753_v55  ;;  %v2730_v42 = vsub.f32 %v2566_v36, %v2963_v1  ;;  %v455_v36 = vsub.f32 %v2713_v62, %v454_v60  ;;  %v1685_v1 = vpack.c.bf16 %v2573_v39, %v2571_v38 }
  0x9c   : > { %1410 = vmatprep.mubr.f32.mxu1 %v345_v3  ;;  %1533 = vmatprep.mubr.f32.mxu0 %v343_v24  ;;  %v475_v3 = vand.u32 4294901760, %v2735_v21  ;;  %v2966_v24 = vand.u32 4294901760, %v2586_v45  ;;  %v1693_v38 = vpack.c.bf16 %v2628_v59, %v2623_v58  ;;  %v1705_v39 = vpack.c.bf16 %v2718_v14, %v2713_v62  ;;  %v2972_v58 = vld [vmem:[#allocation20_spill] sm:$0xff] }
  0x9d   : > { %1411 = vmatmul.mubr.f32.gmra.mrb[2].mxu1 %v355_v47  ;;  %1534 = vmatmul.mubr.f32.gmra.mrb[2].mxu0 %v353_v41  ;;  %v468_v37 = vand.u32 4294901760, %v2730_v42  ;;  %v2744_v47 = vsub.f32 %v2583_v44, %v2965_v56  ;;  %v1765_v41 = vpack.c.bf16 %v447_v57, %v440_v22  ;;  %v456_v61 = vand.u32 4294901760, %v455_v36 }
  0x9e   : > { %1660 = vmatpush3.bf16.msra.mxu1 %v1657_v19  ;;  %1756 = vmatpush3.bf16.msra.mxu0 %v1753_v55  ;;  %v2749_v55 = vsub.f32 %v2586_v45, %v2966_v24  ;;  %v463_v19 = vand.u32 4294901760, %v462_v11  ;;  %v476_v15 = vsub.f32 %v2735_v21, %v475_v3 }
  0x9f   : > { %1662 = vmatprep.subr.bf16.mxu1 %v1661_v54  ;;  %1758 = vmatprep.subr.bf16.mxu0 %v1757_v51  ;;  %v469_v44 = vsub.f32 %v2730_v42, %v468_v37  ;;  %v482_v28 = vand.u32 4294901760, %v2744_v47  ;;  %v1773_v12 = vpack.c.bf16 %v475_v3, %v468_v37 }
  0xa0   : > { %1413 = vmatprep.mubr.f32.mxu1 %v365_v20  ;;  %1536 = vmatprep.mubr.f32.mxu0 %v363_v43  ;;  %v489_v45 = vand.u32 4294901760, %v2749_v55  ;;  %v1673_v43 = vpack.c.bf16 %v463_v19, %v456_v61  ;;  %v477_v22 = vand.u32 4294901760, %v476_v15 }
  0xa1   : > { %1414 = vmatmul.mubr.f32.gmra.mrb[4].mxu1 %v375_v6  ;;  %1537 = vmatmul.mubr.f32.gmra.mrb[4].mxu0 %v373_v2  ;;  %v470_v2 = vand.u32 4294901760, %v469_v44  ;;  %v483_v57 = vsub.f32 %v2744_v47, %v482_v28 }
  0xa2   : > { %1664 = vmatpush3.bf16.msra.mxu1 %v1661_v54  ;;  %1760 = vmatpush3.bf16.msra.mxu0 %v1757_v51  ;;  %v1769_v51 = vpack.c.bf16 %v461_v7, %v454_v60  ;;  %v490_v32 = vsub.f32 %v2749_v55, %v489_v45  ;;  %v1777_v7 = vpack.c.bf16 %v489_v45, %v482_v28 }
  0xa3   : > { %1666 = vmatprep.subr.bf16.mxu1 %v1665_v5  ;;  %1762 = vmatprep.subr.bf16.mxu0 %v1761_v26  ;;  %v1677_v29 = vpack.c.bf16 %v477_v22, %v470_v2  ;;  %v484_v53 = vand.u32 4294901760, %v483_v57 }
  0xa4   : > { %1448 = vmatprep.mubr.f32.mxu1 %v2511_v17  ;;  %1571 = vmatprep.mubr.f32.mxu0 %v2511_v17  ;;  %v491_v54 = vand.u32 4294901760, %v490_v32 }
  0xa6   : > { %1668 = vmatpush3.bf16.msra.mxu1 %v1665_v5  ;;  %1764 = vmatpush3.bf16.msra.mxu0 %v1761_v26  ;;  %v1681_v60 = vpack.c.bf16 %v491_v54, %v484_v53 }
  0xa7   : > { %1670 = vmatprep.subr.bf16.mxu1 %v1669_v31  ;;  %1766 = vmatprep.subr.bf16.mxu0 %v1765_v41 }
  0xaa   : > { %1672 = vmatpush3.bf16.msra.mxu1 %v1669_v31  ;;  %1768 = vmatpush3.bf16.msra.mxu0 %v1765_v41 }
  0xab   : > { %1674 = vmatprep.subr.bf16.mxu1 %v1673_v43  ;;  %1770 = vmatprep.subr.bf16.mxu0 %v1769_v51 }
  0xae   : > { %1676 = vmatpush3.bf16.msra.mxu1 %v1673_v43  ;;  %1772 = vmatpush3.bf16.msra.mxu0 %v1769_v51 }
  0xaf   : > { %1678 = vmatprep.subr.bf16.mxu1 %v1677_v29  ;;  %1774 = vmatprep.subr.bf16.mxu0 %v1773_v12 }
  0xb2   : > { %1680 = vmatpush3.bf16.msra.mxu1 %v1677_v29  ;;  %1776 = vmatpush3.bf16.msra.mxu0 %v1773_v12 }
  0xb3   : > { %1682 = vmatprep.subr.bf16.mxu1 %v1681_v60  ;;  %1778 = vmatprep.subr.bf16.mxu0 %v1777_v7 }
  0xb6   : > { %1684 = vmatpush3.bf16.msra.mxu1 %v1681_v60  ;;  %1780 = vmatpush3.bf16.msra.mxu0 %v1777_v7 }
  0xb7   : > { %1686 = vmatprep.subr.bf16.mxu1 %v1685_v1  ;;  %1782 = vmatprep.subr.bf16.mxu0 %v2494_v10 }
  0xb9   : > { %1449 = vmatmul.mubr.f32.vlgmr.msra.gmra.mrb[0].mxu1 %v2575_v40  ;;  %1572 = vmatmul.mubr.f32.vlgmr.msra.gmra.mrb[0].mxu0 %v2575_v40 }
  0xba   : > { %1688 = vmatpush3.bf16.msra.mxu1 %v1685_v1  ;;  %1784 = vmatpush3.bf16.msra.mxu0 %v2494_v10  ;;  %v1697_v10 = vpack.c.bf16 %v2663_v8, %v2651_v4 }
  0xbb   : > { %1690 = vmatprep.subr.bf16.mxu1 %v1689_v16  ;;  %1786 = vmatprep.subr.bf16.mxu0 %v2498_v13 }
  0xbc   : > { %1451 = vmatprep.mubr.f32.mxu1 %v2606_v52  ;;  %1574 = vmatprep.mubr.f32.mxu0 %v2606_v52 }
  0xbd   : > { %1452 = vmatmul.mubr.f32.gmra.mrb[2].mxu1 %v2635_v63  ;;  %1575 = vmatmul.mubr.f32.gmra.mrb[2].mxu0 %v2635_v63 }
  0xbe   : > { %1692 = vmatpush3.bf16.msra.mxu1 %v1689_v16  ;;  %1788 = vmatpush3.bf16.msra.mxu0 %v2498_v13  ;;  %v1701_v13 = vpack.c.bf16 %v2691_v48, %v2681_v33 }
  0xbf   : > { %1694 = vmatprep.subr.bf16.mxu1 %v1693_v38  ;;  %1790 = vmatprep.subr.bf16.mxu0 %v2519_v18 }
  0xc0   : > { %1454 = vmatprep.mubr.f32.mxu1 %v2665_v9  ;;  %1577 = vmatprep.mubr.f32.mxu0 %v2665_v9 }
  0xc1   : > { %1455 = vmatmul.mubr.f32.gmra.mrb[4].mxu1 %v2696_v0  ;;  %1578 = vmatmul.mubr.f32.gmra.mrb[4].mxu0 %v2696_v0 }
  0xc2   : > { %1696 = vmatpush3.bf16.msra.mxu1 %v1693_v38  ;;  %1792 = vmatpush3.bf16.msra.mxu0 %v2519_v18  ;;  %v2967_v18 = vld [vmem:[#allocation15_spill] sm:$0xff] }
  0xc3   : > { %1698 = vmatprep.subr.bf16.mxu1 %v1697_v10  ;;  %1794 = vmatprep.subr.bf16.mxu0 %v2541_v25 }
  0xc4   : > { %1489 = vmatprep.mubr.f32.mxu1 %v2530_v23  ;;  %1612 = vmatprep.mubr.f32.mxu0 %v2511_v17  ;;  %v1709_v23 = vpack.c.bf16 %v2735_v21, %v2730_v42  ;;  %v2968_v17 = vld [vmem:[#allocation17_spill] sm:$0xff] }
  0xc6   : > { %1700 = vmatpush3.bf16.msra.mxu1 %v1697_v10  ;;  %1796 = vmatpush3.bf16.msra.mxu0 %v2541_v25  ;;  %v1713_v25 = vpack.c.bf16 %v2749_v55, %v2744_v47 }
  0xc7   : > { %1702 = vmatprep.subr.bf16.mxu1 %v1701_v13  ;;  %1798 = vmatprep.subr.bf16.mxu0 %v2562_v34 }
  0xca   : > { %1704 = vmatpush3.bf16.msra.mxu1 %v1701_v13  ;;  %1800 = vmatpush3.bf16.msra.mxu0 %v2562_v34  ;;  %v2969_v34 = vld [vmem:[#allocation19_spill] sm:$0xff] }
  0xcb   : > { %1706 = vmatprep.subr.bf16.mxu1 %v1705_v39  ;;  %1802 = vmatprep.subr.bf16.mxu0 %v2967_v18 }
  0xce   : > { %1708 = vmatpush3.bf16.msra.mxu1 %v1705_v39  ;;  %1804 = vmatpush3.bf16.msra.mxu0 %v2967_v18 }
  0xcf   : > { %1710 = vmatprep.subr.bf16.mxu1 %v1709_v23  ;;  %1806 = vmatprep.subr.bf16.mxu0 %v2968_v17 }
  0xd2   : > { %1712 = vmatpush3.bf16.msra.mxu1 %v1709_v23  ;;  %1808 = vmatpush3.bf16.msra.mxu0 %v2968_v17 }
  0xd3   : > { %1714 = vmatprep.subr.bf16.mxu1 %v1713_v25  ;;  %1810 = vmatprep.subr.bf16.mxu0 %v2969_v34 }
  0xd6   : > { %1716 = vmatpush3.bf16.msra.mxu1 %v1713_v25  ;;  %1812 = vmatpush3.bf16.msra.mxu0 %v2969_v34 }
  0xd9   : > { %1490 = vmatmul.mubr.f32.vlgmr.msra.gmra.mrb[0].mxu1 %v2970_v46  ;;  %1613 = vmatmul.mubr.f32.vlgmr.msra.gmra.mrb[0].mxu0 %v2575_v40 }
  0xda   : > { %1492 = vmatprep.mubr.f32.mxu1 %v2971_v50  ;;  %1615 = vmatprep.mubr.f32.mxu0 %v2606_v52 }
  0xdd   : > { %1493 = vmatmul.mubr.f32.gmra.mrb[2].mxu1 %v2972_v58  ;;  %1616 = vmatmul.mubr.f32.gmra.mrb[2].mxu0 %v2635_v63 }
  0xde   : > { %1495 = vmatprep.mubr.f32.mxu1 %v2674_v30  ;;  %1618 = vmatprep.mubr.f32.mxu0 %v2665_v9 }
  0xe1   : > { %1496 = vmatmul.mubr.f32.gmra.mrb[4].mxu1 %v2704_v35  ;;  %1619 = vmatmul.mubr.f32.gmra.mrb[4].mxu0 %v2696_v0 }
 0x1ac   : > { %v1491_v40 = vpop.f32.mrb[0].mxu1  ;;  %v1614_v59 = vpop.f32.mrb[0].mxu0 }
 0x1ad   : > { %v1813_v52 = vadd.f32 %v1614_v59, %v1491_v40  ;;  %v662_v4 = vpop.f32.mrb[1].mxu1  ;;  %v1062_v8 = vpop.f32.mrb[1].mxu0 }
 0x1ae   : > { %v1814_v33 = vadd.f32 %v1062_v8, %v662_v4 }
 0x1af   : > { %1097 = vst [vmem:[%s215_s21 + $0x8] sm:$0xff] %v1813_v52 }
 0x1b0   : > { %1096 = vst [vmem:[%s215_s21] sm:$0xff] %v1814_v33  ;;  %v1494_v63 = vpop.f32.mrb[2].mxu1  ;;  %v1617_v9 = vpop.f32.mrb[2].mxu0 }
 0x1b1   : > { %v1815_v35 = vadd.f32 %v1617_v9, %v1494_v63  ;;  %v676_v30 = vpop.f32.mrb[3].mxu1  ;;  %v1074_v48 = vpop.f32.mrb[3].mxu0 }
 0x1b2   : > { %v1816_v0 = vadd.f32 %v1074_v48, %v676_v30 }
 0x1b3   : > { %1099 = vst [vmem:[%s215_s21 + $0x18] sm:$0xff] %v1815_v35 }
 0x1b4   : > { %1098 = vst [vmem:[%s215_s21 + $0x10] sm:$0xff] %v1816_v0  ;;  %v1497_v62 = vpop.f32.mrb[4].mxu1  ;;  %v1620_v14 = vpop.f32.mrb[4].mxu0 }
 0x1b5   : > { %v1817_v42 = vadd.f32 %v1620_v14, %v1497_v62  ;;  %v690_v21 = vpop.f32.mrb[5].mxu1  ;;  %v1086_v20 = vpop.f32.mrb[5].mxu0 }
 0x1b6   : > { %v1818_v26 = vadd.f32 %v1086_v20, %v690_v21 }
 0x1b7   : > { %1101 = vst [vmem:[%s215_s21 + $0x28] sm:$0xff] %v1817_v42 }
 0x1b8   : > { %1100 = vst [vmem:[%s215_s21 + $0x20] sm:$0xff] %v1818_v26 }
 0x1b9   : > { %2055 = shalt.err (!%p2052_p8)
}
 0x1ba   : > { %s2056_s27 = scalar_lea.hbm %s2823_s28, 768  ;;  %s2060_s30 = scalar_lea.hbm %s2905_s2, 4608 }
 0x1bb   : > { %p2057_p0 = scmp.ne.s32.totalorder %s2823_s28, %s2056_s27  ;;  %p2061_p7 = scmp.lt.u32.totalorder %s2823_s28, %s2905_s2 }
 0x1bc   : > { %p2062_p10 = scmp.lt.u32.totalorder %s2060_s30, %s2056_s27  ;;  %p2064_p13 = scmp.lt.u32.totalorder %s2056_s27, %s2823_s28 }
 0x1bd   : > { %p2058_p1 = pnand %p2057_p0, %p2973_p6 }
 0x1be   : > { %p2063_p9 = por %p2062_p10, %p2061_p7 }
 0x1bf   : > { %p2059_p5 = pneg %p2058_p1 }
 0x1c0   : > { %p2065_p4 = por %p2064_p13, %p2063_p9 }
 0x1c2   : > { %p2066_p12 = pnand %p2065_p4, %p2059_p5 }
 0x1c4   : > { %2069 = shalt.err (!%p2066_p12)
}
 0x1c5   : > { %s2199_s19 = smov 128   ;;  %s2200_s18 = smov 8  }
 0x1c6   : > { %1851 = dma.vmem_to_hbm [thread:$0]  (%p2973_p6), %s2818_s26, 768, %s2823_s28, %s2827_s29, %s2199_s19, %s2199_s19, %s2200_s18  }
 0x1c7 PF: > { %p1865_p3 = scmp.ge.s32.totalorder %s2192_s22, 2  ;;  %s1133_s8 = sand.u32 1, %s2140_s9  }
 0x1c8   : > { %p2974_p2 = scmp.ne.s32.totalorder %s2949_s5, 0  ;;  %s1134_s6 = scalar_lea.sflag [#allocation4], %s1133_s8 }
 0x1ca   : > { %p1861_p11 = pnand %p1865_p3, %p2974_p2 }
 0x1cc   : > { %2135 = dma.done.wait (!%p1861_p11), %s1134_s6, 768  }
 0x1cd   : > { %2137 = vsyncadd (!%p1861_p11), %s1134_s6, 4294966528  ;;  %s21_s22 = sadd.s32 1, %s2192_s22   ;;  %s2976_s18 = sld [smem:[#allocation11_spill]] }
 0x1ce   : > { %p2856_p8 = scmp.ge.s32.totalorder %s21_s22, 8   ;;  %s2977_s19 = sld [smem:[#allocation12_spill]] }
 0x1cf   : > { %s2978_s3 = sld [smem:[#allocation13_spill]]  ;;  %s2979_s21 = sld [smem:[#allocation14_spill]] }
 0x1d0   : > { %s2981_s9 = smov %s2144_s10  ;;  %s2982_s10 = smov %s2148_s11 }
 0x1d1   : > { %s2983_s11 = smov %s2408_s0  ;;  %s2984_s12 = smov %s2156_s13 }
 0x1d2   : > { %s2985_s13 = smov %s2160_s14  ;;  %s2986_s14 = smov %s2390_s7 }
 0x1d3   : > { %s2987_s15 = smov %s2168_s16  ;;  %s2988_s16 = smov %s2172_s17 }
 0x1d4   : > { %s2989_s17 = smov %s2405_s25  ;;  %20 = sbr.rel (!%p2856_p8) target bundleno = 14 (0xe), region = 86 }
 0x1d5   : > { %s2990_s20 = smov %s2978_s3 }
 0x1db   :  { %1139 = vsyncpa [#allocation3], 1 }
 0x1dc   :  { %1141 = vsyncpa [#allocation3 + $0x1], 1 }
 0x1dd   :  { %1142 = vsyncpa [#allocation6], 1 }
 0x1de   :  { %1144 = vsyncpa [#allocation6 + $0x1], 1 }
 0x1df   :  { %1145 = vsyncpa [#allocation4], 1 }
 0x1e0   :  { %1147 = vsyncpa [#allocation4 + $0x1], 1 }

</bundles_post_ra>
